<compile_context>
chip_gen: v6e
topology: v6e:2x2x1
jax: 0.10.0
libtpu: 0.0.40
codegen_flags: <defaults>
</compile_context>

<pallas_src>
import math

import jax
import jax.numpy as jnp
from jax.experimental import pallas as pl
from jax.experimental.pallas import tpu as pltpu

# ---------------- synthetic configs (small, consistent with the module) ----------------
CONFIGS = {
    "EncDec_Configs": {"embed_dim": 32},
    "Audio_Configs": {"num_mels": 16},
    "Postnet_Configs": {
        "postnet_embedding_dim": 32,
        "postnet_kernel_size": 5,
        "postnet_n_convolutions": 5,
    },
}
BN_EPS = 1e-5
OUT_LANES = 128  # lane-dense output slab width


# ---------------- parameter init (deterministic, xavier-uniform like the PyTorch module) ----
def _xavier_uniform(key, shape, fan_in, fan_out, gain=1.0):
    bound = gain * math.sqrt(6.0 / (fan_in + fan_out))
    return jax.random.uniform(key, shape, jnp.float32, -bound, bound)


def _torch_bias(key, shape, fan_in):
    bound = 1.0 / math.sqrt(fan_in)
    return jax.random.uniform(key, shape, jnp.float32, -bound, bound)


def init_raw_params(key):
    """Raw parameters with PyTorch-equivalent init (LinearNorm = xavier_uniform Linear)."""
    E = CONFIGS["EncDec_Configs"]["embed_dim"]
    M = CONFIGS["Audio_Configs"]["num_mels"]
    H = M // 2
    P = CONFIGS["Postnet_Configs"]["postnet_embedding_dim"]
    K = CONFIGS["Postnet_Configs"]["postnet_kernel_size"]
    NCONV = CONFIGS["Postnet_Configs"]["postnet_n_convolutions"]
    tanh_gain = 5.0 / 3.0  # torch.nn.init.calculate_gain('tanh')

    keys = iter(jax.random.split(key, 8 + 2 * NCONV))
    raw = {
        # Linear weights stored transposed: y = x @ W + b
        "w1": _xavier_uniform(next(keys), (E, H), E, H, 1.0),
        "b1": _torch_bias(next(keys), (1, H), E),
        "w2": _xavier_uniform(next(keys), (H, M), H, M, 1.0),
        "b2": _torch_bias(next(keys), (1, M), H),
        "ws": _xavier_uniform(next(keys), (E, 1), E, 1, 1.0),
        "bs": _torch_bias(next(keys), (1, 1), E),
        "postnet": [],
    }
    io = [(M, P)] + [(P, P)] * (NCONV - 2) + [(P, M)]
    gains = [tanh_gain] * (NCONV - 1) + [1.0]
    for (cin, cout), gain in zip(io, gains):
        w = _xavier_uniform(next(keys), (K, cin, cout), cin * K, cout * K, gain)
        bias = _torch_bias(next(keys), (cout,), cin * K)
        raw["postnet"].append({"w": w, "bias": bias})
    return raw


def prepare_fused_params(raw):
    """Algebraic fusion for the kernel: prenet+stop head matmul, BN folded into conv weights,
    conv weights padded to uniform channel width and reshaped for im2col."""
    E = raw["w1"].shape[0]
    M = raw["w2"].shape[1]
    C = CONFIGS["Postnet_Configs"]["postnet_embedding_dim"]
    K = CONFIGS["Postnet_Configs"]["postnet_kernel_size"]
    bn_scale = 1.0 / math.sqrt(1.0 + BN_EPS)  # gamma=1, running_var=1, mean=0, beta=0

    # prenet (no activation, dropout identity) + stop head fused: (E, M+1)
    w_head = jnp.concatenate([raw["w1"] @ raw["w2"], raw["ws"]], axis=1)
    b_head = jnp.concatenate([raw["b1"] @ raw["w2"] + raw["b2"], raw["bs"]], axis=1)

    w_list, shift_list = [], []
    for layer in raw["postnet"]:
        k_, cin, cout = layer["w"].shape
        w = layer["w"] * bn_scale                                   # fold BN scale into weight
        w = jnp.pad(w, ((0, 0), (0, C - cin), (0, C - cout)))       # uniform (K, C, C)
        w_list.append(w.reshape(k_ * C, C))                         # im2col layout (K*C, C)
        shift = jnp.pad(layer["bias"] * bn_scale, (0, C - cout)).reshape(1, C)
        shift_list.append(shift)
    return {
        "w_head": w_head,                       # (E, M+1)
        "b_head": b_head,                       # (1, M+1)
        "w_conv": jnp.stack(w_list),            # (NCONV, K*C, C)
        "shift_conv": jnp.stack(shift_list),    # (NCONV, 1, C)
    }


# ---------------- fused Pallas kernel ----------------
def _make_fused_kernel(B, T, E, M, C, K, n_conv, out_w):
    pad = (K - 1) // 2
    BT = B * T

    def kernel(x_ref, wh_ref, bh_ref, wc_ref, sc_ref, o_ref):
        # ---- fused prenet + stop head: one (BT, E) @ (E, M+1) matmul ----
        x = x_ref[...]                                                      # (BT, E)
        head = jnp.dot(x, wh_ref[...], preferred_element_type=jnp.float32) + bh_ref[...]
        mel_lin = head[:, :M]                                               # (BT, M)
        stop = head[:, M:M + 1]                                             # (BT, 1)

        # ---- postnet: 5x (conv1d + folded-BN [+ tanh]) entirely in registers/VMEM ----
        if C > M:
            h = jnp.concatenate(
                [mel_lin, jnp.zeros((BT, C - M), jnp.float32)], axis=1)     # pad channels to C
        else:
            h = mel_lin
        zhalo = jnp.zeros((pad, C), jnp.float32)                            # in-kernel halo

        for i in range(n_conv):                                             # static unroll
            w_mat = wc_ref[i]                                               # (K*C, C)
            shift = sc_ref[i]                                               # (1, C)
            cols = []
            for b in range(B):                                              # static unroll
                hb = h[b * T:(b + 1) * T]                                   # (T, C)
                hp = jnp.concatenate([zhalo, hb, zhalo], axis=0)            # (T+K-1, C)
                cols.append(jnp.concatenate(
                    [hp[k:k + T] for k in range(K)], axis=1))               # (T, K*C) im2col
            col = jnp.concatenate(cols, axis=0)                             # (BT, K*C)
            y = jnp.dot(col, w_mat, preferred_element_type=jnp.float32) + shift
            h = jnp.tanh(y) if i < n_conv - 1 else y

        mel_out = mel_lin + h[:, :M]                                        # residual add

        # ---- lane-dense output slab: [mel_lin | mel_out | stop | zero-pad] -> (BT, 128) ----
        pad_cols = jnp.zeros((BT, out_w - (2 * M + 1)), jnp.float32)
        o_ref[...] = jnp.concatenate([mel_lin, mel_out, stop, pad_cols], axis=1)

    return kernel


def head_predictor_forward(x, fused):
    B, T, E = x.shape
    M = CONFIGS["Audio_Configs"]["num_mels"]
    C = CONFIGS["Postnet_Configs"]["postnet_embedding_dim"]
    K = CONFIGS["Postnet_Configs"]["postnet_kernel_size"]
    NCONV = CONFIGS["Postnet_Configs"]["postnet_n_convolutions"]
    BT = B * T
    assert 2 * M + 1 <= OUT_LANES

    kernel = _make_fused_kernel(B, T, E, M, C, K, NCONV, OUT_LANES)
    out = pl.pallas_call(
        kernel,
        out_shape=jax.ShapeDtypeStruct((BT, OUT_LANES), jnp.float32),
        grid=(1,),
        in_specs=[
            pl.BlockSpec((BT, E), lambda i: (0, 0)),
            pl.BlockSpec((E, M + 1), lambda i: (0, 0)),
            pl.BlockSpec((1, M + 1), lambda i: (0, 0)),
            pl.BlockSpec((NCONV, K * C, C), lambda i: (0, 0, 0)),
            pl.BlockSpec((NCONV, 1, C), lambda i: (0, 0, 0)),
        ],
        out_specs=pl.BlockSpec((BT, OUT_LANES), lambda i: (0, 0)),
        compiler_params=pltpu.CompilerParams(dimension_semantics=("arbitrary",)),
    )(x.reshape(BT, E), fused["w_head"], fused["b_head"],
      fused["w_conv"], fused["shift_conv"])

    mel_lin = out[:, :M].reshape(B, T, M)
    mel_out = out[:, M:2 * M].reshape(B, T, M)
    stop = out[:, 2 * M:2 * M + 1].reshape(B, T, 1)
    return mel_lin, mel_out, stop


# ---------------- pure-JAX reference (un-fused, mirrors the PyTorch module) ----------------
def _reference_forward(x, raw):
    B, T, E = x.shape
    M = raw["w2"].shape[1]
    bn_scale = 1.0 / math.sqrt(1.0 + BN_EPS)

    h = x @ raw["w1"] + raw["b1"]            # Linear -> dropout(identity)
    mel = h @ raw["w2"] + raw["b2"]          # Linear
    stop = x @ raw["ws"] + raw["bs"]         # stop Linear on the encoder output

    y = mel
    n = len(raw["postnet"])
    for i, layer in enumerate(raw["postnet"]):
        K, cin, cout = layer["w"].shape
        pad = (K - 1) // 2
        yp = jnp.pad(y, ((0, 0), (pad, pad), (0, 0)))
        acc = jnp.zeros((B, T, cout), jnp.float32)
        for k in range(K):
            acc = acc + jnp.einsum("btc,cd->btd", yp[:, k:k + T, :], layer["w"][k])
        z = (acc + layer["bias"][None, None, :]) * bn_scale          # Conv1d bias + inference BN
        y = jnp.tanh(z) if i < n - 1 else z
    return mel, mel + y, stop


if __name__ == "__main__":
    key = jax.random.PRNGKey(0)
    pkey, xkey = jax.random.split(key)
    raw_params = init_raw_params(pkey)
    fused_params = prepare_fused_params(raw_params)

    B, T = 2, 8
    E = CONFIGS["EncDec_Configs"]["embed_dim"]
    M = CONFIGS["Audio_Configs"]["num_mels"]
    x = jax.random.normal(xkey, (B, T, E), jnp.float32)

    mel_lin, mel_out, stop = head_predictor_forward(x, fused_params)
    jax.block_until_ready((mel_lin, mel_out, stop))

    r_lin, r_out, r_stop = _reference_forward(x, raw_params)
    assert jnp.allclose(mel_lin, r_lin, atol=1e-4, rtol=1e-4)
    assert jnp.allclose(mel_out, r_out, atol=1e-4, rtol=1e-4)
    assert jnp.allclose(stop, r_stop, atol=1e-4, rtol=1e-4)
    assert mel_lin.shape == (B, T, M)
    assert mel_out.shape == (B, T, M)
    assert stop.shape == (B, T, 1)

    print("KERNEL_OK")
</pallas_src>

<mosaic_0001>
module attributes {stable_mosaic.version = 11 : i64} {
  func.func @kernel(%arg0: i32, %arg1: memref<16x32xf32, #tpu.memory_space<vmem>>, %arg2: memref<32x17xf32, #tpu.memory_space<vmem>>, %arg3: memref<1x17xf32, #tpu.memory_space<vmem>>, %arg4: memref<5x160x32xf32, #tpu.memory_space<vmem>>, %arg5: memref<5x1x32xf32, #tpu.memory_space<vmem>>, %arg6: memref<16x128xf32, #tpu.memory_space<vmem>>) attributes {dimension_semantics = [#tpu.dimension_semantics<arbitrary>], iteration_bounds = array<i64: 1>, scalar_prefetch = 0 : i64, scratch_operands = 0 : i64, tpu.core_type = #tpu.core_type<tc>, window_params = [{pipeline_mode = #tpu.pipeline_mode<synchronous>, transform_indices = @transform_0, window_bounds = array<i64: 16, 32>}, {pipeline_mode = #tpu.pipeline_mode<synchronous>, transform_indices = @transform_1, window_bounds = array<i64: 32, 17>}, {pipeline_mode = #tpu.pipeline_mode<synchronous>, transform_indices = @transform_2, window_bounds = array<i64: 1, 17>}, {pipeline_mode = #tpu.pipeline_mode<synchronous>, transform_indices = @transform_3, window_bounds = array<i64: 5, 160, 32>}, {pipeline_mode = #tpu.pipeline_mode<synchronous>, transform_indices = @transform_4, window_bounds = array<i64: 5, 1, 32>}, {pipeline_mode = #tpu.pipeline_mode<synchronous>, transform_indices = @transform_5, window_bounds = array<i64: 16, 128>}]} {
    %c0 = arith.constant 0 : index
    %c0_0 = arith.constant 0 : index
    %0 = vector.load %arg1[%c0, %c0_0] : memref<16x32xf32, #tpu.memory_space<vmem>>, vector<16x32xf32>
    %c0_1 = arith.constant 0 : index
    %c0_2 = arith.constant 0 : index
    %1 = vector.load %arg2[%c0_1, %c0_2] : memref<32x17xf32, #tpu.memory_space<vmem>>, vector<32x17xf32>
    %cst = arith.constant dense<0.000000e+00> : vector<16x17xf32>
    %2 = tpu.matmul %0, %1, %cst {dimension_numbers = #tpu.dot_dimension_numbers<[1], [0], [0], [1], [0, 0, 1, 1], [], []>} : vector<16x32xf32>, vector<32x17xf32>, vector<16x17xf32> -> vector<16x17xf32>
    %c0_3 = arith.constant 0 : index
    %c0_4 = arith.constant 0 : index
    %3 = vector.load %arg3[%c0_3, %c0_4] : memref<1x17xf32, #tpu.memory_space<vmem>>, vector<1x17xf32>
    %4 = vector.broadcast %3 : vector<1x17xf32> to vector<16x17xf32>
    %5 = arith.addf %2, %4 : vector<16x17xf32>
    %6 = vector.extract_strided_slice %5 {offsets = [0, 0], sizes = [16, 16], strides = [1, 1]} : vector<16x17xf32> to vector<16x16xf32>
    %7 = vector.extract_strided_slice %5 {offsets = [0, 16], sizes = [16, 1], strides = [1, 1]} : vector<16x17xf32> to vector<16x1xf32>
    %cst_5 = arith.constant 0.000000e+00 : f32
    %8 = vector.broadcast %cst_5 : f32 to vector<16x16xf32>
    %9 = tpu.concatenate %6, %8 in 1 : vector<16x16xf32>, vector<16x16xf32> -> vector<16x32xf32>
    %cst_6 = arith.constant 0.000000e+00 : f32
    %10 = vector.broadcast %cst_6 : f32 to vector<2x32xf32>
    %c0_7 = arith.constant 0 : index
    %c0_8 = arith.constant 0 : index
    %c0_9 = arith.constant 0 : index
    %11 = vector.load %arg4[%c0_7, %c0_8, %c0_9] : memref<5x160x32xf32, #tpu.memory_space<vmem>>, vector<1x160x32xf32>
    %12 = vector.shape_cast %11 : vector<1x160x32xf32> to vector<160x32xf32>
    %c0_10 = arith.constant 0 : index
    %c0_11 = arith.constant 0 : index
    %c0_12 = arith.constant 0 : index
    %13 = vector.load %arg5[%c0_10, %c0_11, %c0_12] : memref<5x1x32xf32, #tpu.memory_space<vmem>>, vector<1x1x32xf32>
    %14 = vector.shape_cast %13 : vector<1x1x32xf32> to vector<1x32xf32>
    %15 = vector.extract_strided_slice %9 {offsets = [0, 0], sizes = [8, 32], strides = [1, 1]} : vector<16x32xf32> to vector<8x32xf32>
    %16 = tpu.concatenate %10, %15, %10 in 0 : vector<2x32xf32>, vector<8x32xf32>, vector<2x32xf32> -> vector<12x32xf32>
    %17 = vector.extract_strided_slice %16 {offsets = [0, 0], sizes = [8, 32], strides = [1, 1]} : vector<12x32xf32> to vector<8x32xf32>
    %18 = vector.extract_strided_slice %16 {offsets = [1, 0], sizes = [8, 32], strides = [1, 1]} : vector<12x32xf32> to vector<8x32xf32>
    %19 = vector.extract_strided_slice %16 {offsets = [2, 0], sizes = [8, 32], strides = [1, 1]} : vector<12x32xf32> to vector<8x32xf32>
    %20 = vector.extract_strided_slice %16 {offsets = [3, 0], sizes = [8, 32], strides = [1, 1]} : vector<12x32xf32> to vector<8x32xf32>
    %21 = vector.extract_strided_slice %16 {offsets = [4, 0], sizes = [8, 32], strides = [1, 1]} : vector<12x32xf32> to vector<8x32xf32>
    %22 = tpu.concatenate %17, %18, %19, %20, %21 in 1 : vector<8x32xf32>, vector<8x32xf32>, vector<8x32xf32>, vector<8x32xf32>, vector<8x32xf32> -> vector<8x160xf32>
    %23 = vector.extract_strided_slice %9 {offsets = [8, 0], sizes = [8, 32], strides = [1, 1]} : vector<16x32xf32> to vector<8x32xf32>
    %24 = tpu.concatenate %10, %23, %10 in 0 : vector<2x32xf32>, vector<8x32xf32>, vector<2x32xf32> -> vector<12x32xf32>
    %25 = vector.extract_strided_slice %24 {offsets = [0, 0], sizes = [8, 32], strides = [1, 1]} : vector<12x32xf32> to vector<8x32xf32>
    %26 = vector.extract_strided_slice %24 {offsets = [1, 0], sizes = [8, 32], strides = [1, 1]} : vector<12x32xf32> to vector<8x32xf32>
    %27 = vector.extract_strided_slice %24 {offsets = [2, 0], sizes = [8, 32], strides = [1, 1]} : vector<12x32xf32> to vector<8x32xf32>
    %28 = vector.extract_strided_slice %24 {offsets = [3, 0], sizes = [8, 32], strides = [1, 1]} : vector<12x32xf32> to vector<8x32xf32>
    %29 = vector.extract_strided_slice %24 {offsets = [4, 0], sizes = [8, 32], strides = [1, 1]} : vector<12x32xf32> to vector<8x32xf32>
    %30 = tpu.concatenate %25, %26, %27, %28, %29 in 1 : vector<8x32xf32>, vector<8x32xf32>, vector<8x32xf32>, vector<8x32xf32>, vector<8x32xf32> -> vector<8x160xf32>
    %31 = tpu.concatenate %22, %30 in 0 : vector<8x160xf32>, vector<8x160xf32> -> vector<16x160xf32>
    %cst_13 = arith.constant dense<0.000000e+00> : vector<16x32xf32>
    %32 = tpu.matmul %31, %12, %cst_13 {dimension_numbers = #tpu.dot_dimension_numbers<[1], [0], [0], [1], [0, 0, 1, 1], [], []>} : vector<16x160xf32>, vector<160x32xf32>, vector<16x32xf32> -> vector<16x32xf32>
    %33 = vector.broadcast %14 : vector<1x32xf32> to vector<16x32xf32>
    %34 = arith.addf %32, %33 : vector<16x32xf32>
    %35 = math.tanh %34 : vector<16x32xf32>
    %c1 = arith.constant 1 : index
    %c0_14 = arith.constant 0 : index
    %c0_15 = arith.constant 0 : index
    %36 = vector.load %arg4[%c1, %c0_14, %c0_15] : memref<5x160x32xf32, #tpu.memory_space<vmem>>, vector<1x160x32xf32>
    %37 = vector.shape_cast %36 : vector<1x160x32xf32> to vector<160x32xf32>
    %c1_16 = arith.constant 1 : index
    %c0_17 = arith.constant 0 : index
    %c0_18 = arith.constant 0 : index
    %38 = vector.load %arg5[%c1_16, %c0_17, %c0_18] : memref<5x1x32xf32, #tpu.memory_space<vmem>>, vector<1x1x32xf32>
    %39 = vector.shape_cast %38 : vector<1x1x32xf32> to vector<1x32xf32>
    %40 = vector.extract_strided_slice %35 {offsets = [0, 0], sizes = [8, 32], strides = [1, 1]} : vector<16x32xf32> to vector<8x32xf32>
    %41 = tpu.concatenate %10, %40, %10 in 0 : vector<2x32xf32>, vector<8x32xf32>, vector<2x32xf32> -> vector<12x32xf32>
    %42 = vector.extract_strided_slice %41 {offsets = [0, 0], sizes = [8, 32], strides = [1, 1]} : vector<12x32xf32> to vector<8x32xf32>
    %43 = vector.extract_strided_slice %41 {offsets = [1, 0], sizes = [8, 32], strides = [1, 1]} : vector<12x32xf32> to vector<8x32xf32>
    %44 = vector.extract_strided_slice %41 {offsets = [2, 0], sizes = [8, 32], strides = [1, 1]} : vector<12x32xf32> to vector<8x32xf32>
    %45 = vector.extract_strided_slice %41 {offsets = [3, 0], sizes = [8, 32], strides = [1, 1]} : vector<12x32xf32> to vector<8x32xf32>
    %46 = vector.extract_strided_slice %41 {offsets = [4, 0], sizes = [8, 32], strides = [1, 1]} : vector<12x32xf32> to vector<8x32xf32>
    %47 = tpu.concatenate %42, %43, %44, %45, %46 in 1 : vector<8x32xf32>, vector<8x32xf32>, vector<8x32xf32>, vector<8x32xf32>, vector<8x32xf32> -> vector<8x160xf32>
    %48 = vector.extract_strided_slice %35 {offsets = [8, 0], sizes = [8, 32], strides = [1, 1]} : vector<16x32xf32> to vector<8x32xf32>
    %49 = tpu.concatenate %10, %48, %10 in 0 : vector<2x32xf32>, vector<8x32xf32>, vector<2x32xf32> -> vector<12x32xf32>
    %50 = vector.extract_strided_slice %49 {offsets = [0, 0], sizes = [8, 32], strides = [1, 1]} : vector<12x32xf32> to vector<8x32xf32>
    %51 = vector.extract_strided_slice %49 {offsets = [1, 0], sizes = [8, 32], strides = [1, 1]} : vector<12x32xf32> to vector<8x32xf32>
    %52 = vector.extract_strided_slice %49 {offsets = [2, 0], sizes = [8, 32], strides = [1, 1]} : vector<12x32xf32> to vector<8x32xf32>
    %53 = vector.extract_strided_slice %49 {offsets = [3, 0], sizes = [8, 32], strides = [1, 1]} : vector<12x32xf32> to vector<8x32xf32>
    %54 = vector.extract_strided_slice %49 {offsets = [4, 0], sizes = [8, 32], strides = [1, 1]} : vector<12x32xf32> to vector<8x32xf32>
    %55 = tpu.concatenate %50, %51, %52, %53, %54 in 1 : vector<8x32xf32>, vector<8x32xf32>, vector<8x32xf32>, vector<8x32xf32>, vector<8x32xf32> -> vector<8x160xf32>
    %56 = tpu.concatenate %47, %55 in 0 : vector<8x160xf32>, vector<8x160xf32> -> vector<16x160xf32>
    %cst_19 = arith.constant dense<0.000000e+00> : vector<16x32xf32>
    %57 = tpu.matmul %56, %37, %cst_19 {dimension_numbers = #tpu.dot_dimension_numbers<[1], [0], [0], [1], [0, 0, 1, 1], [], []>} : vector<16x160xf32>, vector<160x32xf32>, vector<16x32xf32> -> vector<16x32xf32>
    %58 = vector.broadcast %39 : vector<1x32xf32> to vector<16x32xf32>
    %59 = arith.addf %57, %58 : vector<16x32xf32>
    %60 = math.tanh %59 : vector<16x32xf32>
    %c2 = arith.constant 2 : index
    %c0_20 = arith.constant 0 : index
    %c0_21 = arith.constant 0 : index
    %61 = vector.load %arg4[%c2, %c0_20, %c0_21] : memref<5x160x32xf32, #tpu.memory_space<vmem>>, vector<1x160x32xf32>
    %62 = vector.shape_cast %61 : vector<1x160x32xf32> to vector<160x32xf32>
    %c2_22 = arith.constant 2 : index
    %c0_23 = arith.constant 0 : index
    %c0_24 = arith.constant 0 : index
    %63 = vector.load %arg5[%c2_22, %c0_23, %c0_24] : memref<5x1x32xf32, #tpu.memory_space<vmem>>, vector<1x1x32xf32>
    %64 = vector.shape_cast %63 : vector<1x1x32xf32> to vector<1x32xf32>
    %65 = vector.extract_strided_slice %60 {offsets = [0, 0], sizes = [8, 32], strides = [1, 1]} : vector<16x32xf32> to vector<8x32xf32>
    %66 = tpu.concatenate %10, %65, %10 in 0 : vector<2x32xf32>, vector<8x32xf32>, vector<2x32xf32> -> vector<12x32xf32>
    %67 = vector.extract_strided_slice %66 {offsets = [0, 0], sizes = [8, 32], strides = [1, 1]} : vector<12x32xf32> to vector<8x32xf32>
    %68 = vector.extract_strided_slice %66 {offsets = [1, 0], sizes = [8, 32], strides = [1, 1]} : vector<12x32xf32> to vector<8x32xf32>
    %69 = vector.extract_strided_slice %66 {offsets = [2, 0], sizes = [8, 32], strides = [1, 1]} : vector<12x32xf32> to vector<8x32xf32>
    %70 = vector.extract_strided_slice %66 {offsets = [3, 0], sizes = [8, 32], strides = [1, 1]} : vector<12x32xf32> to vector<8x32xf32>
    %71 = vector.extract_strided_slice %66 {offsets = [4, 0], sizes = [8, 32], strides = [1, 1]} : vector<12x32xf32> to vector<8x32xf32>
    %72 = tpu.concatenate %67, %68, %69, %70, %71 in 1 : vector<8x32xf32>, vector<8x32xf32>, vector<8x32xf32>, vector<8x32xf32>, vector<8x32xf32> -> vector<8x160xf32>
    %73 = vector.extract_strided_slice %60 {offsets = [8, 0], sizes = [8, 32], strides = [1, 1]} : vector<16x32xf32> to vector<8x32xf32>
    %74 = tpu.concatenate %10, %73, %10 in 0 : vector<2x32xf32>, vector<8x32xf32>, vector<2x32xf32> -> vector<12x32xf32>
    %75 = vector.extract_strided_slice %74 {offsets = [0, 0], sizes = [8, 32], strides = [1, 1]} : vector<12x32xf32> to vector<8x32xf32>
    %76 = vector.extract_strided_slice %74 {offsets = [1, 0], sizes = [8, 32], strides = [1, 1]} : vector<12x32xf32> to vector<8x32xf32>
    %77 = vector.extract_strided_slice %74 {offsets = [2, 0], sizes = [8, 32], strides = [1, 1]} : vector<12x32xf32> to vector<8x32xf32>
    %78 = vector.extract_strided_slice %74 {offsets = [3, 0], sizes = [8, 32], strides = [1, 1]} : vector<12x32xf32> to vector<8x32xf32>
    %79 = vector.extract_strided_slice %74 {offsets = [4, 0], sizes = [8, 32], strides = [1, 1]} : vector<12x32xf32> to vector<8x32xf32>
    %80 = tpu.concatenate %75, %76, %77, %78, %79 in 1 : vector<8x32xf32>, vector<8x32xf32>, vector<8x32xf32>, vector<8x32xf32>, vector<8x32xf32> -> vector<8x160xf32>
    %81 = tpu.concatenate %72, %80 in 0 : vector<8x160xf32>, vector<8x160xf32> -> vector<16x160xf32>
    %cst_25 = arith.constant dense<0.000000e+00> : vector<16x32xf32>
    %82 = tpu.matmul %81, %62, %cst_25 {dimension_numbers = #tpu.dot_dimension_numbers<[1], [0], [0], [1], [0, 0, 1, 1], [], []>} : vector<16x160xf32>, vector<160x32xf32>, vector<16x32xf32> -> vector<16x32xf32>
    %83 = vector.broadcast %64 : vector<1x32xf32> to vector<16x32xf32>
    %84 = arith.addf %82, %83 : vector<16x32xf32>
    %85 = math.tanh %84 : vector<16x32xf32>
    %c3 = arith.constant 3 : index
    %c0_26 = arith.constant 0 : index
    %c0_27 = arith.constant 0 : index
    %86 = vector.load %arg4[%c3, %c0_26, %c0_27] : memref<5x160x32xf32, #tpu.memory_space<vmem>>, vector<1x160x32xf32>
    %87 = vector.shape_cast %86 : vector<1x160x32xf32> to vector<160x32xf32>
    %c3_28 = arith.constant 3 : index
    %c0_29 = arith.constant 0 : index
    %c0_30 = arith.constant 0 : index
    %88 = vector.load %arg5[%c3_28, %c0_29, %c0_30] : memref<5x1x32xf32, #tpu.memory_space<vmem>>, vector<1x1x32xf32>
    %89 = vector.shape_cast %88 : vector<1x1x32xf32> to vector<1x32xf32>
    %90 = vector.extract_strided_slice %85 {offsets = [0, 0], sizes = [8, 32], strides = [1, 1]} : vector<16x32xf32> to vector<8x32xf32>
    %91 = tpu.concatenate %10, %90, %10 in 0 : vector<2x32xf32>, vector<8x32xf32>, vector<2x32xf32> -> vector<12x32xf32>
    %92 = vector.extract_strided_slice %91 {offsets = [0, 0], sizes = [8, 32], strides = [1, 1]} : vector<12x32xf32> to vector<8x32xf32>
    %93 = vector.extract_strided_slice %91 {offsets = [1, 0], sizes = [8, 32], strides = [1, 1]} : vector<12x32xf32> to vector<8x32xf32>
    %94 = vector.extract_strided_slice %91 {offsets = [2, 0], sizes = [8, 32], strides = [1, 1]} : vector<12x32xf32> to vector<8x32xf32>
    %95 = vector.extract_strided_slice %91 {offsets = [3, 0], sizes = [8, 32], strides = [1, 1]} : vector<12x32xf32> to vector<8x32xf32>
    %96 = vector.extract_strided_slice %91 {offsets = [4, 0], sizes = [8, 32], strides = [1, 1]} : vector<12x32xf32> to vector<8x32xf32>
    %97 = tpu.concatenate %92, %93, %94, %95, %96 in 1 : vector<8x32xf32>, vector<8x32xf32>, vector<8x32xf32>, vector<8x32xf32>, vector<8x32xf32> -> vector<8x160xf32>
    %98 = vector.extract_strided_slice %85 {offsets = [8, 0], sizes = [8, 32], strides = [1, 1]} : vector<16x32xf32> to vector<8x32xf32>
    %99 = tpu.concatenate %10, %98, %10 in 0 : vector<2x32xf32>, vector<8x32xf32>, vector<2x32xf32> -> vector<12x32xf32>
    %100 = vector.extract_strided_slice %99 {offsets = [0, 0], sizes = [8, 32], strides = [1, 1]} : vector<12x32xf32> to vector<8x32xf32>
    %101 = vector.extract_strided_slice %99 {offsets = [1, 0], sizes = [8, 32], strides = [1, 1]} : vector<12x32xf32> to vector<8x32xf32>
    %102 = vector.extract_strided_slice %99 {offsets = [2, 0], sizes = [8, 32], strides = [1, 1]} : vector<12x32xf32> to vector<8x32xf32>
    %103 = vector.extract_strided_slice %99 {offsets = [3, 0], sizes = [8, 32], strides = [1, 1]} : vector<12x32xf32> to vector<8x32xf32>
    %104 = vector.extract_strided_slice %99 {offsets = [4, 0], sizes = [8, 32], strides = [1, 1]} : vector<12x32xf32> to vector<8x32xf32>
    %105 = tpu.concatenate %100, %101, %102, %103, %104 in 1 : vector<8x32xf32>, vector<8x32xf32>, vector<8x32xf32>, vector<8x32xf32>, vector<8x32xf32> -> vector<8x160xf32>
    %106 = tpu.concatenate %97, %105 in 0 : vector<8x160xf32>, vector<8x160xf32> -> vector<16x160xf32>
    %cst_31 = arith.constant dense<0.000000e+00> : vector<16x32xf32>
    %107 = tpu.matmul %106, %87, %cst_31 {dimension_numbers = #tpu.dot_dimension_numbers<[1], [0], [0], [1], [0, 0, 1, 1], [], []>} : vector<16x160xf32>, vector<160x32xf32>, vector<16x32xf32> -> vector<16x32xf32>
    %108 = vector.broadcast %89 : vector<1x32xf32> to vector<16x32xf32>
    %109 = arith.addf %107, %108 : vector<16x32xf32>
    %110 = math.tanh %109 : vector<16x32xf32>
    %c4 = arith.constant 4 : index
    %c0_32 = arith.constant 0 : index
    %c0_33 = arith.constant 0 : index
    %111 = vector.load %arg4[%c4, %c0_32, %c0_33] : memref<5x160x32xf32, #tpu.memory_space<vmem>>, vector<1x160x32xf32>
    %112 = vector.shape_cast %111 : vector<1x160x32xf32> to vector<160x32xf32>
    %c4_34 = arith.constant 4 : index
    %c0_35 = arith.constant 0 : index
    %c0_36 = arith.constant 0 : index
    %113 = vector.load %arg5[%c4_34, %c0_35, %c0_36] : memref<5x1x32xf32, #tpu.memory_space<vmem>>, vector<1x1x32xf32>
    %114 = vector.shape_cast %113 : vector<1x1x32xf32> to vector<1x32xf32>
    %115 = vector.extract_strided_slice %110 {offsets = [0, 0], sizes = [8, 32], strides = [1, 1]} : vector<16x32xf32> to vector<8x32xf32>
    %116 = tpu.concatenate %10, %115, %10 in 0 : vector<2x32xf32>, vector<8x32xf32>, vector<2x32xf32> -> vector<12x32xf32>
    %117 = vector.extract_strided_slice %116 {offsets = [0, 0], sizes = [8, 32], strides = [1, 1]} : vector<12x32xf32> to vector<8x32xf32>
    %118 = vector.extract_strided_slice %116 {offsets = [1, 0], sizes = [8, 32], strides = [1, 1]} : vector<12x32xf32> to vector<8x32xf32>
    %119 = vector.extract_strided_slice %116 {offsets = [2, 0], sizes = [8, 32], strides = [1, 1]} : vector<12x32xf32> to vector<8x32xf32>
    %120 = vector.extract_strided_slice %116 {offsets = [3, 0], sizes = [8, 32], strides = [1, 1]} : vector<12x32xf32> to vector<8x32xf32>
    %121 = vector.extract_strided_slice %116 {offsets = [4, 0], sizes = [8, 32], strides = [1, 1]} : vector<12x32xf32> to vector<8x32xf32>
    %122 = tpu.concatenate %117, %118, %119, %120, %121 in 1 : vector<8x32xf32>, vector<8x32xf32>, vector<8x32xf32>, vector<8x32xf32>, vector<8x32xf32> -> vector<8x160xf32>
    %123 = vector.extract_strided_slice %110 {offsets = [8, 0], sizes = [8, 32], strides = [1, 1]} : vector<16x32xf32> to vector<8x32xf32>
    %124 = tpu.concatenate %10, %123, %10 in 0 : vector<2x32xf32>, vector<8x32xf32>, vector<2x32xf32> -> vector<12x32xf32>
    %125 = vector.extract_strided_slice %124 {offsets = [0, 0], sizes = [8, 32], strides = [1, 1]} : vector<12x32xf32> to vector<8x32xf32>
    %126 = vector.extract_strided_slice %124 {offsets = [1, 0], sizes = [8, 32], strides = [1, 1]} : vector<12x32xf32> to vector<8x32xf32>
    %127 = vector.extract_strided_slice %124 {offsets = [2, 0], sizes = [8, 32], strides = [1, 1]} : vector<12x32xf32> to vector<8x32xf32>
    %128 = vector.extract_strided_slice %124 {offsets = [3, 0], sizes = [8, 32], strides = [1, 1]} : vector<12x32xf32> to vector<8x32xf32>
    %129 = vector.extract_strided_slice %124 {offsets = [4, 0], sizes = [8, 32], strides = [1, 1]} : vector<12x32xf32> to vector<8x32xf32>
    %130 = tpu.concatenate %125, %126, %127, %128, %129 in 1 : vector<8x32xf32>, vector<8x32xf32>, vector<8x32xf32>, vector<8x32xf32>, vector<8x32xf32> -> vector<8x160xf32>
    %131 = tpu.concatenate %122, %130 in 0 : vector<8x160xf32>, vector<8x160xf32> -> vector<16x160xf32>
    %cst_37 = arith.constant dense<0.000000e+00> : vector<16x32xf32>
    %132 = tpu.matmul %131, %112, %cst_37 {dimension_numbers = #tpu.dot_dimension_numbers<[1], [0], [0], [1], [0, 0, 1, 1], [], []>} : vector<16x160xf32>, vector<160x32xf32>, vector<16x32xf32> -> vector<16x32xf32>
    %133 = vector.broadcast %114 : vector<1x32xf32> to vector<16x32xf32>
    %134 = arith.addf %132, %133 : vector<16x32xf32>
    %135 = vector.extract_strided_slice %134 {offsets = [0, 0], sizes = [16, 16], strides = [1, 1]} : vector<16x32xf32> to vector<16x16xf32>
    %136 = arith.addf %6, %135 : vector<16x16xf32>
    %cst_38 = arith.constant 0.000000e+00 : f32
    %137 = vector.broadcast %cst_38 : f32 to vector<16x95xf32>
    %138 = tpu.concatenate %6, %136, %7, %137 in 1 : vector<16x16xf32>, vector<16x16xf32>, vector<16x1xf32>, vector<16x95xf32> -> vector<16x128xf32>
    %c0_39 = arith.constant 0 : index
    %c0_40 = arith.constant 0 : index
    %139 = vector.load %arg6[%c0_39, %c0_40] : memref<16x128xf32, #tpu.memory_space<vmem>>, vector<16x128xf32>
    tpu.vector_store %arg6[%c0_39, %c0_40], %138 {strides = array<i32>} : memref<16x128xf32, #tpu.memory_space<vmem>>, vector<16x128xf32>,
    return
  }
  func.func @transform_0(%arg0: i32) -> (i32, i32) {
    %c0_i32 = arith.constant 0 : i32
    %c0_i32_0 = arith.constant 0 : i32
    %c0_i32_1 = arith.constant 0 : i32
    return %c0_i32, %c0_i32_0 : i32, i32
  }
  func.func @transform_1(%arg0: i32) -> (i32, i32) {
    %c0_i32 = arith.constant 0 : i32
    %c0_i32_0 = arith.constant 0 : i32
    %c0_i32_1 = arith.constant 0 : i32
    return %c0_i32, %c0_i32_0 : i32, i32
  }
  func.func @transform_2(%arg0: i32) -> (i32, i32) {
    %c0_i32 = arith.constant 0 : i32
    %c0_i32_0 = arith.constant 0 : i32
    %c0_i32_1 = arith.constant 0 : i32
    return %c0_i32, %c0_i32_0 : i32, i32
  }
  func.func @transform_3(%arg0: i32) -> (i32, i32, i32) {
    %c0_i32 = arith.constant 0 : i32
    %c0_i32_0 = arith.constant 0 : i32
    %c0_i32_1 = arith.constant 0 : i32
    %c0_i32_2 = arith.constant 0 : i32
    return %c0_i32, %c0_i32_0, %c0_i32_1 : i32, i32, i32
  }
  func.func @transform_4(%arg0: i32) -> (i32, i32, i32) {
    %c0_i32 = arith.constant 0 : i32
    %c0_i32_0 = arith.constant 0 : i32
    %c0_i32_1 = arith.constant 0 : i32
    %c0_i32_2 = arith.constant 0 : i32
    return %c0_i32, %c0_i32_0, %c0_i32_1 : i32, i32, i32
  }
  func.func @transform_5(%arg0: i32) -> (i32, i32) {
    %c0_i32 = arith.constant 0 : i32
    %c0_i32_0 = arith.constant 0 : i32
    %c0_i32_1 = arith.constant 0 : i32
    return %c0_i32, %c0_i32_0 : i32, i32
  }
}

</mosaic_0001>

<bundles_post_ra>
// kernel: tpu_custom_call.1
= control target key start
LH: loop header
LB: loop body
LE: loop exit
PB: predicated region body
PF: predicated region fallthrough
CT: control target
= control target key end

     0   :  { %vm34_vm0 = vcmask 261120   ;;  %s1817_s0 = inlined_call_operand.vmem [shape: f32[16,32], index: 0, kind: input, shape index: {}]   ;;  %s1818_s1 = inlined_call_operand.vmem [shape: f32[32,17], index: 1, kind: input, shape index: {}]   ;;  %s1819_s2 = inlined_call_operand.vmem [shape: f32[1,17], index: 2, kind: input, shape index: {}]   ;;  %s1820_s3 = inlined_call_operand.vmem [shape: f32[5,160,32], index: 3, kind: input, shape index: {}]   ;;  %s1821_s4 = inlined_call_operand.vmem [shape: f32[5,1,32], index: 4, kind: input, shape index: {}]   ;;  %s1822_s5 = inlined_call_operand.hbm [shape: f32[16,128], index: 5, kind: output, shape index: {}]  }
   0x1   :  { %v26_v0 = vld [vmem:[%s1818_s1 + $0x18] sm:$0xff]  ;;  %v25_v1 = vld [vmem:[%s1818_s1 + $0x10] sm:$0xff]  ;;  %v21_v2 = vld [vmem:[%s1817_s0] sm:$0xff] }
   0x2   :  { %1133 = vmatprep.subr.mxu0 %v26_v0  ;;  %v24_v3 = vld [vmem:[%s1818_s1 + $0x8] sm:$0xff]  ;;  %1141 = vmatprep.mubr.msk.f32.mxu0 %vm34_vm0, %v21_v2 }
   0x3   :  { %1134 = vmatpush3.msra.mxu0 %v26_v0 }
   0x4   :  { %10 = vsyncpa [#allocation3], 0  ;;  %1135 = vmatprep.subr.mxu0 %v25_v1  ;;  %v23_v4 = vld [vmem:[%s1818_s1] sm:$0xff]  ;;  %v22_v5 = vld [vmem:[%s1817_s0 + $0x8] sm:$0xff]  ;;  %v1190_v7 = vmov 0.0   ;;  %vm116_vm1 = vcmask 130048  }
   0x5   :  { %1136 = vmatpush3.msra.mxu0 %v25_v1  ;;  %v134_v6 = vld [vmem:[%s1820_s3 + $0x78] sm:$0xff]  ;;  %219 = vmatprep.subr.mxu1 %v1190_v7  ;;  %v133_v8 = vld [vmem:[%s1820_s3 + $0x70] sm:$0xff]  ;;  %v132_v9 = vld [vmem:[%s1820_s3 + $0x68] sm:$0xff]  ;;  %vm143_vm2 = vcmask 1041408   ;;  %vm148_vm3 = vcmask 1046528   ;;  %s1191_s17 = smov 32  }
   0x6   :  { %1137 = vmatprep.subr.mxu0 %v24_v3  ;;  %220 = vmatpush1.msra.mxu1 %v134_v6  ;;  %v131_v10 = vld [vmem:[%s1820_s3 + $0x60] sm:$0xff]  ;;  %v130_v11 = vld [vmem:[%s1820_s3 + $0x58] sm:$0xff]  ;;  %v129_v12 = vld [vmem:[%s1820_s3 + $0x50] sm:$0xff]  ;;  %vm169_vm4 = vcmask 1043456   ;;  %vm162_vm5 = vcmask 1044480   ;;  %s1192_s18 = smov 96  }
   0x7   :  { %1138 = vmatpush3.msra.mxu0 %v24_v3  ;;  %221 = vmatprep.subr.mxu1 %v1190_v7  ;;  %v128_v13 = vld [vmem:[%s1820_s3 + $0x48] sm:$0xff]  ;;  %v127_v14 = vld [vmem:[%s1820_s3 + $0x40] sm:$0xff]  ;;  %v126_v15 = vld [vmem:[%s1820_s3 + $0x38] sm:$0xff]  ;;  %vm155_vm6 = vcmask 1045504   ;;  %s1193_s19 = smov 64   ;;  %vm174_vm7 = vcmask 523264  }
   0x8   :  { %1139 = vmatprep.subr.mxu0 %v23_v4  ;;  %222 = vmatpush1.msra.mxu1 %v133_v8  ;;  %v125_v16 = vld [vmem:[%s1820_s3 + $0x30] sm:$0xff]  ;;  %v124_v17 = vld [vmem:[%s1820_s3 + $0x28] sm:$0xff]  ;;  %v123_v18 = vld [vmem:[%s1820_s3 + $0x20] sm:$0xff]  ;;  %vm176_vm8 = vcmask 785408   ;;  %vm1004_vm9 = vcmask 269312  }
   0x9   :  { %1140 = vmatpush3.msra.mxu0 %v23_v4  ;;  %223 = vmatprep.subr.mxu1 %v1190_v7  ;;  %v122_v19 = vld [vmem:[%s1820_s3 + $0x18] sm:$0xff]  ;;  %v121_v20 = vld [vmem:[%s1820_s3 + $0x10] sm:$0xff]  ;;  %v120_v21 = vld [vmem:[%s1820_s3 + $0x8] sm:$0xff] }
   0xa   :  { %1142 = vmatmul.mubr.msk.f32.vlgmr.msra.gmra.mxu0 %vm34_vm0, %v22_v5  ;;  %391 = vmatprep.subr.mxu0 %v1190_v7  ;;  %v119_v22 = vld [vmem:[%s1820_s3] sm:$0xff]  ;;  %v138_v23 = vld [vmem:[%s1820_s3 + $0x98] sm:$0xff]  ;;  %v137_v26 = vld [vmem:[%s1820_s3 + $0x90] sm:$0xff] }
   0xb   :  { %224 = vmatpush1.msra.mxu1 %v132_v9  ;;  %v1025_v24 = vld [vmem:[%s1819_s2] ss:$0 sm:$0xff]  ;;  %v136_v27 = vld [vmem:[%s1820_s3 + $0x88] sm:$0xff] }
   0xc   :  { %225 = vmatprep.subr.mxu1 %v1190_v7  ;;  %v135_v33 = vld [vmem:[%s1820_s3 + $0x80] sm:$0xff] }
   0xd   :  { %226 = vmatpush1.msra.mxu1 %v131_v10 }
   0xe   :  { %227 = vmatprep.subr.mxu1 %v1190_v7 }
   0xf   :  { %228 = vmatpush1.msra.mxu1 %v130_v11 }
  0x10   :  { %229 = vmatprep.subr.mxu1 %v1190_v7 }
  0x11   :  { %230 = vmatpush1.msra.mxu1 %v129_v12 }
  0x12   :  { %231 = vmatprep.subr.mxu1 %v1190_v7 }
  0x13   :  { %232 = vmatpush1.msra.mxu1 %v128_v13  ;;  %v1046_v13 = vld [vmem:[%s1820_s3 + $0x118] sm:$0xff] }
  0x14   :  { %233 = vmatprep.subr.mxu1 %v1190_v7  ;;  %392 = vmatpush1.msra.mxu0 %v1046_v13 }
  0x15   :  { %234 = vmatpush1.msra.mxu1 %v127_v14  ;;  %v1045_v14 = vld [vmem:[%s1820_s3 + $0x110] sm:$0xff]  ;;  %393 = vmatprep.subr.mxu0 %v1190_v7 }
  0x16   :  { %235 = vmatprep.subr.mxu1 %v1190_v7  ;;  %394 = vmatpush1.msra.mxu0 %v1045_v14 }
  0x17   :  { %236 = vmatpush1.msra.mxu1 %v126_v15  ;;  %v1044_v15 = vld [vmem:[%s1820_s3 + $0x108] sm:$0xff]  ;;  %395 = vmatprep.subr.mxu0 %v1190_v7 }
  0x18   :  { %237 = vmatprep.subr.mxu1 %v1190_v7  ;;  %396 = vmatpush1.msra.mxu0 %v1044_v15 }
  0x19   :  { %238 = vmatpush1.msra.mxu1 %v125_v16  ;;  %v1043_v16 = vld [vmem:[%s1820_s3 + $0x100] sm:$0xff]  ;;  %397 = vmatprep.subr.mxu0 %v1190_v7 }
  0x1a   :  { %239 = vmatprep.subr.mxu1 %v1190_v7  ;;  %398 = vmatpush1.msra.mxu0 %v1043_v16 }
  0x1b   :  { %240 = vmatpush1.msra.mxu1 %v124_v17  ;;  %v1042_v17 = vld [vmem:[%s1820_s3 + $0xf8] sm:$0xff]  ;;  %399 = vmatprep.subr.mxu0 %v1190_v7 }
  0x1c   :  { %241 = vmatprep.subr.mxu1 %v1190_v7  ;;  %400 = vmatpush1.msra.mxu0 %v1042_v17 }
  0x1d   :  { %242 = vmatpush1.msra.mxu1 %v123_v18  ;;  %v1041_v18 = vld [vmem:[%s1820_s3 + $0xf0] sm:$0xff]  ;;  %401 = vmatprep.subr.mxu0 %v1190_v7 }
  0x1e   :  { %243 = vmatprep.subr.mxu1 %v1190_v7  ;;  %402 = vmatpush1.msra.mxu0 %v1041_v18 }
  0x1f   :  { %244 = vmatpush1.msra.mxu1 %v122_v19  ;;  %v1040_v19 = vld [vmem:[%s1820_s3 + $0xe8] sm:$0xff]  ;;  %403 = vmatprep.subr.mxu0 %v1190_v7 }
  0x20   :  { %245 = vmatprep.subr.mxu1 %v1190_v7  ;;  %404 = vmatpush1.msra.mxu0 %v1040_v19 }
  0x21   :  { %246 = vmatpush1.msra.mxu1 %v121_v20  ;;  %v1039_v20 = vld [vmem:[%s1820_s3 + $0xe0] sm:$0xff]  ;;  %405 = vmatprep.subr.mxu0 %v1190_v7 }
  0x22   :  { %247 = vmatprep.subr.mxu1 %v1190_v7  ;;  %406 = vmatpush1.msra.mxu0 %v1039_v20 }
  0x23   :  { %248 = vmatpush1.msra.mxu1 %v120_v21  ;;  %v1038_v21 = vld [vmem:[%s1820_s3 + $0xd8] sm:$0xff]  ;;  %407 = vmatprep.subr.mxu0 %v1190_v7 }
  0x24   :  { %249 = vmatprep.subr.mxu1 %v1190_v7  ;;  %408 = vmatpush1.msra.mxu0 %v1038_v21 }
  0x25   :  { %250 = vmatpush1.msra.mxu1 %v119_v22  ;;  %v1037_v22 = vld [vmem:[%s1820_s3 + $0xd0] sm:$0xff]  ;;  %409 = vmatprep.subr.mxu0 %v1190_v7 }
  0x26   :  { %275 = vmatprep.subr.mxu1 %v1190_v7  ;;  %410 = vmatpush1.msra.mxu0 %v1037_v22 }
  0x27   :  { %276 = vmatpush2.msra.mxu1 %v138_v23  ;;  %v1036_v23 = vld [vmem:[%s1820_s3 + $0xc8] sm:$0xff]  ;;  %411 = vmatprep.subr.mxu0 %v1190_v7 }
  0x28   :  { %277 = vmatprep.subr.mxu1 %v1190_v7  ;;  %412 = vmatpush1.msra.mxu0 %v1036_v23  ;;  %v1070_v23 = vld [vmem:[%s1820_s3 + $0x1b8] sm:$0xff] }
  0x29   :  { %278 = vmatpush2.msra.mxu1 %v137_v26  ;;  %413 = vmatprep.subr.mxu0 %v1190_v7  ;;  %v1033_v26 = vld [vmem:[%s1820_s3 + $0xb0] sm:$0xff] }
  0x2a   :  { %279 = vmatprep.subr.mxu1 %v1190_v7 }
  0x2b   :  { %280 = vmatpush2.msra.mxu1 %v136_v27  ;;  %v1032_v27 = vld [vmem:[%s1820_s3 + $0xa8] sm:$0xff] }
  0x2c   :  { %281 = vmatprep.subr.mxu1 %v1190_v7 }
  0x2d   :  { %282 = vmatpush2.msra.mxu1 %v135_v33 }
  0x2e   :  { %563 = vmatprep.subr.mxu1 %v1190_v7 }
  0xca   :  { %v1143_v25 = vpop.f32.mrf.mxu0 }
  0xcb   :  { %v1327_v28 = vadd.f32 %v1143_v25, %v1025_v24  ;;  %v1034_v25 = vld [vmem:[%s1820_s3 + $0xb8] sm:$0xff] }
  0xcc   :  { %v107_v29 = vpop.f32.mrf.mxu0 }
  0xcd   :  { %v118_v30 = vsel %vm116_vm1, %v1327_v28, 0.0  ;;  %v1332_v31 = vadd.f32 %v1025_v24, %v107_v29  ;;  %v1035_v24 = vld [vmem:[%s1820_s3 + $0xc0] sm:$0xff] }
  0xce   :  { %v179_v32 = vrot.slane %v118_v30, 6  ;;  %414 = vmatpush1.msra.mxu0 %v1035_v24  ;;  %v1031_v29 = vld [vmem:[%s1820_s3 + $0xa0] sm:$0xff]  ;;  %v1050_v30 = vld [vmem:[%s1820_s3 + $0x138] sm:$0xff]  ;;  %v1069_v24 = vld [vmem:[%s1820_s3 + $0x1b0] sm:$0xff] }
  0xcf   :  { %v117_v34 = vsel %vm116_vm1, %v1332_v31, 0.0  ;;  %415 = vmatprep.subr.mxu0 %v1190_v7 }
  0xd0   :  { %v181_v35 = vsel %vm143_vm2, 0.0, %v179_v32  ;;  %v141_v36 = vrot.slane %v117_v34, 6  ;;  %v182_v37 = vsel %vm143_vm2, %v179_v32, 0.0  ;;  %416 = vmatpush1.msra.mxu0 %v1034_v25  ;;  %v1028_v32 = vld [vmem:[%s1821_s4] ss:$0 sm:$0xff]  ;;  %v1068_v25 = vld [vmem:[%s1820_s3 + $0x1a8] sm:$0xff] }
  0xd1   :  { %v185_v38 = vrot.slane %v181_v35, 1  ;;  %v186_v39 = vrot.slane %v182_v37, 1  ;;  %v197_v54 = vrot.slane %v181_v35, 3  ;;  %v198_v55 = vrot.slane %v182_v37, 3  ;;  %417 = vmatprep.subr.mxu0 %v1190_v7 }
  0xd2   :  { %v144_v40 = vsel %vm143_vm2, 0.0, %v141_v36  ;;  %v145_v41 = vsel %vm143_vm2, %v141_v36, 0.0  ;;  %v191_v57 = vrot.slane %v181_v35, 2  ;;  %v192_v58 = vrot.slane %v182_v37, 2  ;;  %418 = vmatpush1.msra.mxu0 %v1033_v26  ;;  %v1067_v26 = vld [vmem:[%s1820_s3 + $0x1a0] sm:$0xff] }
  0xd3   :  { %v187_v42 = vsel %vm148_vm3, %v185_v38, %v186_v39  ;;  %v170_v43 = vrot.slane %v144_v40, 4  ;;  %v171_v44 = vrot.slane %v145_v41, 4  ;;  %v149_v45 = vrot.slane %v144_v40, 1  ;;  %419 = vmatprep.subr.mxu0 %v1190_v7  ;;  %v1049_v39 = vld [vmem:[%s1820_s3 + $0x130] sm:$0xff] }
  0xd4   :  { %188 = vrot.lane.b32.xlu1 %v187_v42, %s1191_s17  ;;  %v150_v46 = vrot.slane %v145_v41, 1  ;;  %v163_v47 = vrot.slane %v144_v40, 3  ;;  %v164_v48 = vrot.slane %v145_v41, 3  ;;  %v156_v51 = vrot.slane %v144_v40, 2  ;;  %420 = vmatpush1.msra.mxu0 %v1032_v27  ;;  %v1066_v27 = vld [vmem:[%s1820_s3 + $0x198] sm:$0xff] }
  0xd5   :  { %v172_v49 = vsel %vm169_vm4, %v170_v43, %v171_v44  ;;  %v157_v52 = vrot.slane %v145_v41, 2  ;;  %v199_v59 = vsel %vm162_vm5, %v197_v54, %v198_v55  ;;  %v193_v60 = vsel %vm155_vm6, %v191_v57, %v192_v58  ;;  %421 = vmatprep.subr.mxu0 %v1190_v7  ;;  %v1047_v41 = vld [vmem:[%s1820_s3 + $0x120] sm:$0xff] }
  0xd6   :  { %1029 = vmatprep.mubr.msk.f32.mxu1 %vm34_vm0, %v172_v49  ;;  %v151_v50 = vsel %vm148_vm3, %v149_v45, %v150_v46  ;;  %v165_v53 = vsel %vm162_vm5, %v163_v47, %v164_v48  ;;  %v203_v0 = vrot.slane %v181_v35, 4  ;;  %v204_v1 = vrot.slane %v182_v37, 4  ;;  %422 = vmatpush1.msra.mxu0 %v1031_v29  ;;  %v1065_v29 = vld [vmem:[%s1820_s3 + $0x190] sm:$0xff] }
  0xd7   :  { %152 = vrot.lane.b32.xlu0 %v151_v50, %s1191_s17  ;;  %v158_v56 = vsel %vm155_vm6, %v156_v51, %v157_v52  ;;  %447 = vmatprep.subr.mxu0 %v1190_v7 }
  0xd8   :  { %166 = vrot.lane.b32.xlu1 %v165_v53, %s1192_s18  ;;  %v205_v6 = vsel %vm169_vm4, %v203_v0, %v204_v1  ;;  %448 = vmatpush2.msra.mxu0 %v1050_v30  ;;  %v1064_v30 = vld [vmem:[%s1820_s3 + $0x188] sm:$0xff] }
  0xd9   :  { %449 = vmatprep.subr.mxu0 %v1190_v7 }
  0xda   :  { %450 = vmatpush2.msra.mxu0 %v1049_v39  ;;  %v1056_v39 = vld [vmem:[%s1820_s3 + $0x148] sm:$0xff] }
  0xdb   :  { %159 = vrot.lane.b32.xlu0 %v158_v56, %s1193_s19  ;;  %451 = vmatprep.subr.mxu0 %v1190_v7 }
  0xdc   :  { %200 = vrot.lane.b32.xlu1 %v199_v59, %s1192_s18 }
  0xdf   :  { %194 = vrot.lane.b32.xlu0 %v193_v60, %s1193_s19 }
 0x146   :  { %v189_v61 = vpop.permute.xlu1 %188 }
 0x147   :  { %v206_v8 = vsel %vm34_vm0, %v181_v35, %v189_v61 }
 0x149   :  { %v153_v62 = vpop.permute.xlu0 %152 }
 0x14a   :  { %v167_v63 = vpop.permute.xlu1 %166  ;;  %v173_v2 = vsel %vm34_vm0, %v144_v40, %v153_v62  ;;  %v1048_v40 = vld [vmem:[%s1820_s3 + $0x128] sm:$0xff] }
 0x14b   :  { %452 = vmatpush2.msra.mxu0 %v1048_v40  ;;  %v1055_v40 = vld [vmem:[%s1820_s3 + $0x140] sm:$0xff] }
 0x14c   :  { %453 = vmatprep.subr.mxu0 %v1190_v7 }
 0x14d   :  { %v160_v3 = vpop.permute.xlu0 %159  ;;  %454 = vmatpush2.msra.mxu0 %v1047_v41  ;;  %v1074_v41 = vld [vmem:[%s1820_s3 + $0x1d8] sm:$0xff] }
 0x14e   :  { %v175_v4 = vsel %vm174_vm7, %v173_v2, %v160_v3  ;;  %v201_v10 = vpop.permute.xlu1 %200  ;;  %735 = vmatprep.subr.mxu0 %v1190_v7 }
 0x14f   :  { %v177_v5 = vsel %vm176_vm8, %v175_v4, %v167_v63 }
 0x150   :  { %284 = vmatmul.mubr.f32.vlgmr.msra.gmra.mxu1 %v177_v5 }
 0x151   :  { %1030 = vmatprep.mubr.msk.f32.mxu1 %vm34_vm0, %v205_v6  ;;  %v195_v9 = vpop.permute.xlu0 %194  ;;  %564 = vmatpush1.msra.mxu1 %v1070_v23 }
 0x152   :  { %v207_v11 = vsel %vm174_vm7, %v206_v8, %v195_v9  ;;  %565 = vmatprep.subr.mxu1 %v1190_v7 }
 0x153   :  { %v208_v12 = vsel %vm176_vm8, %v207_v11, %v201_v10  ;;  %566 = vmatpush1.msra.mxu1 %v1069_v24 }
 0x154   :  { %289 = vmatmul.mubr.f32.gmra.mxu1 %v208_v12  ;;  %567 = vmatprep.subr.mxu1 %v1190_v7 }
 0x155   :  { %568 = vmatpush1.msra.mxu1 %v1068_v25 }
 0x156   :  { %569 = vmatprep.subr.mxu1 %v1190_v7 }
 0x157   :  { %570 = vmatpush1.msra.mxu1 %v1067_v26 }
 0x158   :  { %571 = vmatprep.subr.mxu1 %v1190_v7 }
 0x159   :  { %572 = vmatpush1.msra.mxu1 %v1066_v27 }
 0x15a   :  { %573 = vmatprep.subr.mxu1 %v1190_v7 }
 0x15b   :  { %574 = vmatpush1.msra.mxu1 %v1065_v29 }
 0x15c   :  { %575 = vmatprep.subr.mxu1 %v1190_v7 }
 0x15d   :  { %576 = vmatpush1.msra.mxu1 %v1064_v30 }
 0x15e   :  { %577 = vmatprep.subr.mxu1 %v1190_v7 }
 0x210   :  { %v285_v33 = vpop.f32.mrf.mxu1 }
 0x211   :  { %v286_v34 = vadd.f32 %v1028_v32, %v285_v33  ;;  %v1062_v33 = vld [vmem:[%s1820_s3 + $0x178] sm:$0xff] }
 0x212   :  { %v287_v35 = vpop.f32.mrf.mxu1 }
 0x213   :  { %1152 = vtanh.f32 %v286_v34  ;;  %v1061_v34 = vld [vmem:[%s1820_s3 + $0x170] sm:$0xff]  ;;  %v1060_v35 = vld [vmem:[%s1820_s3 + $0x168] sm:$0xff] }
 0x214   :  { %v290_v36 = vpop.f32.mrf.mxu1 }
 0x215   :  { %v291_v37 = vadd.f32 %v1028_v32, %v290_v36  ;;  %v1063_v32 = vld [vmem:[%s1820_s3 + $0x180] sm:$0xff] }
 0x216   :  { %v292_v38 = vpop.f32.mrf.mxu1  ;;  %578 = vmatpush1.msra.mxu1 %v1063_v32  ;;  %v1059_v36 = vld [vmem:[%s1820_s3 + $0x160] sm:$0xff] }
 0x217   :  { %1154 = vtanh.f32 %v291_v37  ;;  %579 = vmatprep.subr.mxu1 %v1190_v7  ;;  %v1058_v37 = vld [vmem:[%s1820_s3 + $0x158] sm:$0xff]  ;;  %v1057_v38 = vld [vmem:[%s1820_s3 + $0x150] sm:$0xff] }
 0x218   :  { %580 = vmatpush1.msra.mxu1 %v1062_v33 }
 0x219   :  { %581 = vmatprep.subr.mxu1 %v1190_v7 }
 0x21a   :  { %582 = vmatpush1.msra.mxu1 %v1061_v34 }
 0x21b   :  { %583 = vmatprep.subr.mxu1 %v1190_v7 }
 0x21c   :  { %584 = vmatpush1.msra.mxu1 %v1060_v35  ;;  %v1094_v35 = vld [vmem:[%s1820_s3 + $0x258] sm:$0xff] }
 0x21d   :  { %585 = vmatprep.subr.mxu1 %v1190_v7 }
 0x21e   :  { %586 = vmatpush1.msra.mxu1 %v1059_v36  ;;  %v1093_v36 = vld [vmem:[%s1820_s3 + $0x250] sm:$0xff] }
 0x21f   :  { %587 = vmatprep.subr.mxu1 %v1190_v7 }
 0x220   :  { %v1153_v42 = vpop.eup %1152  ;;  %588 = vmatpush1.msra.mxu1 %v1058_v37  ;;  %v1092_v37 = vld [vmem:[%s1820_s3 + $0x248] sm:$0xff] }
 0x221   :  { %v320_v43 = vrot.slane %v1153_v42, 6  ;;  %589 = vmatprep.subr.mxu1 %v1190_v7  ;;  %v1052_v42 = vld [vmem:[%s1821_s4 + $0x1] ss:$0 sm:$0xff] }
 0x222   :  { %590 = vmatpush1.msra.mxu1 %v1057_v38  ;;  %v1091_v38 = vld [vmem:[%s1820_s3 + $0x240] sm:$0xff] }
 0x223   :  { %v322_v44 = vsel %vm143_vm2, 0.0, %v320_v43  ;;  %v323_v45 = vsel %vm143_vm2, %v320_v43, 0.0  ;;  %591 = vmatprep.subr.mxu1 %v1190_v7 }
 0x224   :  { %v1155_v46 = vpop.eup %1154  ;;  %v344_v47 = vrot.slane %v322_v44, 4  ;;  %v345_v48 = vrot.slane %v323_v45, 4  ;;  %v332_v49 = vrot.slane %v322_v44, 2  ;;  %v333_v50 = vrot.slane %v323_v45, 2  ;;  %592 = vmatpush1.msra.mxu1 %v1056_v39  ;;  %v1090_v39 = vld [vmem:[%s1820_s3 + $0x238] sm:$0xff] }
 0x225   :  { %v351_v51 = vrot.slane %v1155_v46, 6  ;;  %v326_v52 = vrot.slane %v322_v44, 1  ;;  %v327_v53 = vrot.slane %v323_v45, 1  ;;  %v338_v56 = vrot.slane %v322_v44, 3  ;;  %593 = vmatprep.subr.mxu1 %v1190_v7 }
 0x226   :  { %v346_v54 = vsel %vm169_vm4, %v344_v47, %v345_v48  ;;  %v334_v55 = vsel %vm155_vm6, %v332_v49, %v333_v50  ;;  %v339_v60 = vrot.slane %v323_v45, 3  ;;  %594 = vmatpush1.msra.mxu1 %v1055_v40  ;;  %v1073_v49 = vld [vmem:[%s1820_s3 + $0x1d0] sm:$0xff]  ;;  %v1072_v50 = vld [vmem:[%s1820_s3 + $0x1c8] sm:$0xff] }
 0x227   :  { %v353_v57 = vsel %vm143_vm2, 0.0, %v351_v51  ;;  %v354_v58 = vsel %vm143_vm2, %v351_v51, 0.0  ;;  %1053 = vmatprep.mubr.msk.f32.mxu0 %vm34_vm0, %v346_v54  ;;  %335 = vrot.lane.b32.xlu1 %v334_v55, %s1193_s19  ;;  %v328_v59 = vsel %vm148_vm3, %v326_v52, %v327_v53  ;;  %v1071_v51 = vld [vmem:[%s1820_s3 + $0x1c0] sm:$0xff]  ;;  %v1089_v40 = vld [vmem:[%s1820_s3 + $0x230] sm:$0xff] }
 0x228   :  { %329 = vrot.lane.b32.xlu0 %v328_v59, %s1191_s17  ;;  %v357_v61 = vrot.slane %v353_v57, 1  ;;  %v358_v62 = vrot.slane %v354_v58, 1  ;;  %v369_v0 = vrot.slane %v353_v57, 3  ;;  %v370_v1 = vrot.slane %v354_v58, 3  ;;  %619 = vmatprep.subr.mxu1 %v1190_v7 }
 0x229   :  { %v340_v2 = vsel %vm162_vm5, %v338_v56, %v339_v60  ;;  %v363_v3 = vrot.slane %v353_v57, 2  ;;  %v364_v4 = vrot.slane %v354_v58, 2  ;;  %v375_v11 = vrot.slane %v353_v57, 4  ;;  %620 = vmatpush2.msra.mxu1 %v1074_v41  ;;  %v1088_v41 = vld [vmem:[%s1820_s3 + $0x228] sm:$0xff] }
 0x22a   :  { %v359_v63 = vsel %vm148_vm3, %v357_v61, %v358_v62  ;;  %v371_v5 = vsel %vm162_vm5, %v369_v0, %v370_v1  ;;  %v376_v12 = vrot.slane %v354_v58, 4  ;;  %621 = vmatprep.subr.mxu1 %v1190_v7 }
 0x22b   :  { %360 = vrot.lane.b32.xlu1 %v359_v63, %s1191_s17  ;;  %v365_v6 = vsel %vm155_vm6, %v363_v3, %v364_v4  ;;  %622 = vmatpush2.msra.mxu1 %v1073_v49  ;;  %v1080_v49 = vld [vmem:[%s1820_s3 + $0x1e8] sm:$0xff] }
 0x22c   :  { %341 = vrot.lane.b32.xlu0 %v340_v2, %s1192_s18  ;;  %v377_v17 = vsel %vm169_vm4, %v375_v11, %v376_v12  ;;  %623 = vmatprep.subr.mxu1 %v1190_v7 }
 0x22d   :  { %624 = vmatpush2.msra.mxu1 %v1072_v50  ;;  %v1079_v50 = vld [vmem:[%s1820_s3 + $0x1e0] sm:$0xff] }
 0x22e   :  { %625 = vmatprep.subr.mxu1 %v1190_v7 }
 0x22f   :  { %372 = vrot.lane.b32.xlu1 %v371_v5, %s1192_s18  ;;  %626 = vmatpush2.msra.mxu1 %v1071_v51  ;;  %v1098_v51 = vld [vmem:[%s1820_s3 + $0x278] sm:$0xff] }
 0x230   :  { %366 = vrot.lane.b32.xlu0 %v365_v6, %s1193_s19  ;;  %907 = vmatprep.subr.mxu1 %v1190_v7 }
 0x299   :  { %v336_v8 = vpop.permute.xlu1 %335 }
 0x29a   :  { %v330_v9 = vpop.permute.xlu0 %329 }
 0x29b   :  { %v347_v10 = vsel %vm34_vm0, %v322_v44, %v330_v9 }
 0x29c   :  { %v348_v14 = vsel %vm174_vm7, %v347_v10, %v336_v8 }
 0x29d   :  { %v361_v13 = vpop.permute.xlu1 %360 }
 0x29e   :  { %v342_v15 = vpop.permute.xlu0 %341  ;;  %v378_v19 = vsel %vm34_vm0, %v353_v57, %v361_v13 }
 0x29f   :  { %v349_v16 = vsel %vm176_vm8, %v348_v14, %v342_v15 }
 0x2a0   :  { %456 = vmatmul.mubr.f32.vlgmr.msra.gmra.mxu0 %v349_v16 }
 0x2a1   :  { %1054 = vmatprep.mubr.msk.f32.mxu0 %vm34_vm0, %v377_v17  ;;  %v373_v18 = vpop.permute.xlu1 %372  ;;  %736 = vmatpush1.msra.mxu0 %v1094_v35 }
 0x2a2   :  { %v367_v20 = vpop.permute.xlu0 %366  ;;  %737 = vmatprep.subr.mxu0 %v1190_v7 }
 0x2a3   :  { %v379_v21 = vsel %vm174_vm7, %v378_v19, %v367_v20  ;;  %738 = vmatpush1.msra.mxu0 %v1093_v36 }
 0x2a4   :  { %v380_v22 = vsel %vm176_vm8, %v379_v21, %v373_v18  ;;  %739 = vmatprep.subr.mxu0 %v1190_v7 }
 0x2a5   :  { %461 = vmatmul.mubr.f32.gmra.mxu0 %v380_v22 }
 0x2a6   :  { %740 = vmatpush1.msra.mxu0 %v1092_v37 }
 0x2a7   :  { %741 = vmatprep.subr.mxu0 %v1190_v7 }
 0x2a8   :  { %742 = vmatpush1.msra.mxu0 %v1091_v38 }
 0x2a9   :  { %743 = vmatprep.subr.mxu0 %v1190_v7 }
 0x2aa   :  { %744 = vmatpush1.msra.mxu0 %v1090_v39 }
 0x2ab   :  { %745 = vmatprep.subr.mxu0 %v1190_v7 }
 0x2ac   :  { %746 = vmatpush1.msra.mxu0 %v1089_v40 }
 0x2ad   :  { %747 = vmatprep.subr.mxu0 %v1190_v7 }
 0x2ae   :  { %748 = vmatpush1.msra.mxu0 %v1088_v41 }
 0x2af   :  { %749 = vmatprep.subr.mxu0 %v1190_v7 }
 0x360   :  { %v457_v43 = vpop.f32.mrf.mxu0 }
 0x361   :  { %v458_v44 = vadd.f32 %v1052_v42, %v457_v43  ;;  %v1086_v43 = vld [vmem:[%s1820_s3 + $0x218] sm:$0xff] }
 0x362   :  { %v459_v45 = vpop.f32.mrf.mxu0 }
 0x363   :  { %1156 = vtanh.f32 %v458_v44  ;;  %v1085_v44 = vld [vmem:[%s1820_s3 + $0x210] sm:$0xff]  ;;  %v1084_v45 = vld [vmem:[%s1820_s3 + $0x208] sm:$0xff] }
 0x365   :  { %v462_v46 = vpop.f32.mrf.mxu0 }
 0x366   :  { %v463_v47 = vadd.f32 %v1052_v42, %v462_v46  ;;  %v1087_v42 = vld [vmem:[%s1820_s3 + $0x220] sm:$0xff] }
 0x367   :  { %v464_v48 = vpop.f32.mrf.mxu0  ;;  %750 = vmatpush1.msra.mxu0 %v1087_v42  ;;  %v1083_v46 = vld [vmem:[%s1820_s3 + $0x200] sm:$0xff] }
 0x368   :  { %1158 = vtanh.f32 %v463_v47  ;;  %751 = vmatprep.subr.mxu0 %v1190_v7  ;;  %v1082_v47 = vld [vmem:[%s1820_s3 + $0x1f8] sm:$0xff]  ;;  %v1081_v48 = vld [vmem:[%s1820_s3 + $0x1f0] sm:$0xff] }
 0x369   :  { %752 = vmatpush1.msra.mxu0 %v1086_v43 }
 0x36a   :  { %753 = vmatprep.subr.mxu0 %v1190_v7 }
 0x36b   :  { %754 = vmatpush1.msra.mxu0 %v1085_v44 }
 0x36c   :  { %755 = vmatprep.subr.mxu0 %v1190_v7 }
 0x36d   :  { %756 = vmatpush1.msra.mxu0 %v1084_v45  ;;  %v1118_v45 = vld [vmem:[%s1820_s3 + $0x2f8] sm:$0xff] }
 0x36e   :  { %757 = vmatprep.subr.mxu0 %v1190_v7 }
 0x36f   :  { %758 = vmatpush1.msra.mxu0 %v1083_v46  ;;  %v1117_v46 = vld [vmem:[%s1820_s3 + $0x2f0] sm:$0xff] }
 0x370   :  { %v1157_v52 = vpop.eup %1156  ;;  %759 = vmatprep.subr.mxu0 %v1190_v7 }
 0x371   :  { %v492_v53 = vrot.slane %v1157_v52, 6  ;;  %760 = vmatpush1.msra.mxu0 %v1082_v47  ;;  %v1076_v52 = vld [vmem:[%s1821_s4 + $0x2] ss:$0 sm:$0xff]  ;;  %v1116_v47 = vld [vmem:[%s1820_s3 + $0x2e8] sm:$0xff] }
 0x372   :  { %761 = vmatprep.subr.mxu0 %v1190_v7 }
 0x373   :  { %v494_v54 = vsel %vm143_vm2, 0.0, %v492_v53  ;;  %v495_v55 = vsel %vm143_vm2, %v492_v53, 0.0  ;;  %762 = vmatpush1.msra.mxu0 %v1081_v48  ;;  %v1115_v48 = vld [vmem:[%s1820_s3 + $0x2e0] sm:$0xff] }
 0x374   :  { %v516_v56 = vrot.slane %v494_v54, 4  ;;  %v517_v57 = vrot.slane %v495_v55, 4  ;;  %v504_v58 = vrot.slane %v494_v54, 2  ;;  %v505_v59 = vrot.slane %v495_v55, 2  ;;  %763 = vmatprep.subr.mxu0 %v1190_v7 }
 0x375   :  { %v1159_v60 = vpop.eup %1158  ;;  %v498_v61 = vrot.slane %v494_v54, 1  ;;  %v499_v62 = vrot.slane %v495_v55, 1  ;;  %v510_v63 = vrot.slane %v494_v54, 3  ;;  %v511_v3 = vrot.slane %v495_v55, 3  ;;  %764 = vmatpush1.msra.mxu0 %v1080_v49  ;;  %v1114_v49 = vld [vmem:[%s1820_s3 + $0x2d8] sm:$0xff] }
 0x376   :  { %v523_v0 = vrot.slane %v1159_v60, 6  ;;  %v518_v1 = vsel %vm169_vm4, %v516_v56, %v517_v57  ;;  %v506_v2 = vsel %vm155_vm6, %v504_v58, %v505_v59  ;;  %765 = vmatprep.subr.mxu0 %v1190_v7  ;;  %v1097_v59 = vld [vmem:[%s1820_s3 + $0x270] sm:$0xff]  ;;  %v1096_v60 = vld [vmem:[%s1820_s3 + $0x268] sm:$0xff] }
 0x377   :  { %1077 = vmatprep.mubr.msk.f32.mxu1 %vm34_vm0, %v518_v1  ;;  %507 = vrot.lane.b32.xlu1 %v506_v2, %s1193_s19  ;;  %v500_v4 = vsel %vm148_vm3, %v498_v61, %v499_v62  ;;  %v512_v10 = vsel %vm162_vm5, %v510_v63, %v511_v3  ;;  %v1095_v61 = vld [vmem:[%s1820_s3 + $0x260] sm:$0xff] }
 0x378   :  { %v525_v5 = vsel %vm143_vm2, 0.0, %v523_v0  ;;  %v526_v6 = vsel %vm143_vm2, %v523_v0, 0.0  ;;  %501 = vrot.lane.b32.xlu0 %v500_v4, %s1191_s17  ;;  %766 = vmatpush1.msra.mxu0 %v1079_v50  ;;  %v1113_v50 = vld [vmem:[%s1820_s3 + $0x2d0] sm:$0xff] }
 0x379   :  { %v529_v8 = vrot.slane %v525_v5, 1  ;;  %v530_v9 = vrot.slane %v526_v6, 1  ;;  %v535_v11 = vrot.slane %v525_v5, 2  ;;  %v536_v13 = vrot.slane %v526_v6, 2  ;;  %791 = vmatprep.subr.mxu0 %v1190_v7 }
 0x37a   :  { %v541_v14 = vrot.slane %v525_v5, 3  ;;  %v542_v15 = vrot.slane %v526_v6, 3  ;;  %v547_v21 = vrot.slane %v525_v5, 4  ;;  %v548_v22 = vrot.slane %v526_v6, 4  ;;  %792 = vmatpush2.msra.mxu0 %v1098_v51  ;;  %v1112_v51 = vld [vmem:[%s1820_s3 + $0x2c8] sm:$0xff] }
 0x37b   :  { %v531_v12 = vsel %vm148_vm3, %v529_v8, %v530_v9  ;;  %v537_v16 = vsel %vm155_vm6, %v535_v11, %v536_v13  ;;  %793 = vmatprep.subr.mxu0 %v1190_v7 }
 0x37c   :  { %513 = vrot.lane.b32.xlu0 %v512_v10, %s1192_s18  ;;  %532 = vrot.lane.b32.xlu1 %v531_v12, %s1191_s17  ;;  %v543_v17 = vsel %vm162_vm5, %v541_v14, %v542_v15  ;;  %v549_v27 = vsel %vm169_vm4, %v547_v21, %v548_v22 }
 0x37d   :  { %794 = vmatpush2.msra.mxu0 %v1097_v59  ;;  %v1104_v59 = vld [vmem:[%s1820_s3 + $0x288] sm:$0xff] }
 0x37e   :  { %795 = vmatprep.subr.mxu0 %v1190_v7 }
 0x37f   :  { %796 = vmatpush2.msra.mxu0 %v1096_v60  ;;  %v1103_v60 = vld [vmem:[%s1820_s3 + $0x280] sm:$0xff] }
 0x380   :  { %538 = vrot.lane.b32.xlu0 %v537_v16, %s1193_s19  ;;  %544 = vrot.lane.b32.xlu1 %v543_v17, %s1192_s18 }
 0x381   :  { %797 = vmatprep.subr.mxu0 %v1190_v7 }
 0x382   :  { %798 = vmatpush2.msra.mxu0 %v1095_v61  ;;  %v1122_v61 = vld [vmem:[%s1820_s3 + $0x318] sm:$0xff] }
 0x3e9   :  { %v508_v18 = vpop.permute.xlu1 %507 }
 0x3ea   :  { %v502_v19 = vpop.permute.xlu0 %501 }
 0x3eb   :  { %v519_v20 = vsel %vm34_vm0, %v494_v54, %v502_v19 }
 0x3ec   :  { %v520_v23 = vsel %vm174_vm7, %v519_v20, %v508_v18 }
 0x3ee   :  { %v514_v24 = vpop.permute.xlu0 %513  ;;  %v533_v25 = vpop.permute.xlu1 %532 }
 0x3ef   :  { %v521_v26 = vsel %vm176_vm8, %v520_v23, %v514_v24  ;;  %v550_v29 = vsel %vm34_vm0, %v525_v5, %v533_v25 }
 0x3f0   :  { %628 = vmatmul.mubr.f32.vlgmr.msra.gmra.mxu1 %v521_v26 }
 0x3f1   :  { %1078 = vmatprep.mubr.msk.f32.mxu1 %vm34_vm0, %v549_v27  ;;  %908 = vmatpush1.msra.mxu1 %v1118_v45 }
 0x3f2   :  { %v539_v30 = vpop.permute.xlu0 %538  ;;  %v545_v32 = vpop.permute.xlu1 %544  ;;  %909 = vmatprep.subr.mxu1 %v1190_v7 }
 0x3f3   :  { %v551_v33 = vsel %vm174_vm7, %v550_v29, %v539_v30  ;;  %910 = vmatpush1.msra.mxu1 %v1117_v46 }
 0x3f4   :  { %v552_v34 = vsel %vm176_vm8, %v551_v33, %v545_v32  ;;  %911 = vmatprep.subr.mxu1 %v1190_v7 }
 0x3f5   :  { %633 = vmatmul.mubr.f32.gmra.mxu1 %v552_v34 }
 0x3f6   :  { %912 = vmatpush1.msra.mxu1 %v1116_v47 }
 0x3f7   :  { %913 = vmatprep.subr.mxu1 %v1190_v7 }
 0x3f8   :  { %914 = vmatpush1.msra.mxu1 %v1115_v48 }
 0x3f9   :  { %915 = vmatprep.subr.mxu1 %v1190_v7 }
 0x3fa   :  { %916 = vmatpush1.msra.mxu1 %v1114_v49 }
 0x3fb   :  { %917 = vmatprep.subr.mxu1 %v1190_v7 }
 0x3fc   :  { %918 = vmatpush1.msra.mxu1 %v1113_v50 }
 0x3fd   :  { %919 = vmatprep.subr.mxu1 %v1190_v7 }
 0x3fe   :  { %920 = vmatpush1.msra.mxu1 %v1112_v51 }
 0x3ff   :  { %921 = vmatprep.subr.mxu1 %v1190_v7 }
 0x4b0   :  { %v629_v53 = vpop.f32.mrf.mxu1 }
 0x4b1   :  { %v630_v54 = vadd.f32 %v1076_v52, %v629_v53  ;;  %v1110_v53 = vld [vmem:[%s1820_s3 + $0x2b8] sm:$0xff] }
 0x4b2   :  { %v631_v55 = vpop.f32.mrf.mxu1 }
 0x4b3   :  { %1160 = vtanh.f32 %v630_v54  ;;  %v1109_v54 = vld [vmem:[%s1820_s3 + $0x2b0] sm:$0xff]  ;;  %v1108_v55 = vld [vmem:[%s1820_s3 + $0x2a8] sm:$0xff] }
 0x4b5   :  { %v634_v56 = vpop.f32.mrf.mxu1 }
 0x4b6   :  { %v635_v57 = vadd.f32 %v1076_v52, %v634_v56  ;;  %v1111_v52 = vld [vmem:[%s1820_s3 + $0x2c0] sm:$0xff] }
 0x4b7   :  { %v636_v58 = vpop.f32.mrf.mxu1  ;;  %922 = vmatpush1.msra.mxu1 %v1111_v52  ;;  %v1107_v56 = vld [vmem:[%s1820_s3 + $0x2a0] sm:$0xff] }
 0x4b8   :  { %1162 = vtanh.f32 %v635_v57  ;;  %923 = vmatprep.subr.mxu1 %v1190_v7  ;;  %v1106_v57 = vld [vmem:[%s1820_s3 + $0x298] sm:$0xff]  ;;  %v1105_v58 = vld [vmem:[%s1820_s3 + $0x290] sm:$0xff] }
 0x4b9   :  { %924 = vmatpush1.msra.mxu1 %v1110_v53 }
 0x4ba   :  { %925 = vmatprep.subr.mxu1 %v1190_v7 }
 0x4bb   :  { %926 = vmatpush1.msra.mxu1 %v1109_v54  ;;  %v1124_v54 = vld [vmem:[%s1821_s4 + $0x4] ss:$0 sm:$0xff] }
 0x4bc   :  { %927 = vmatprep.subr.mxu1 %v1190_v7 }
 0x4bd   :  { %928 = vmatpush1.msra.mxu1 %v1108_v55 }
 0x4be   :  { %929 = vmatprep.subr.mxu1 %v1190_v7 }
 0x4bf   :  { %930 = vmatpush1.msra.mxu1 %v1107_v56 }
 0x4c0   :  { %v1161_v62 = vpop.eup %1160  ;;  %931 = vmatprep.subr.mxu1 %v1190_v7 }
 0x4c1   :  { %v664_v63 = vrot.slane %v1161_v62, 6  ;;  %932 = vmatpush1.msra.mxu1 %v1106_v57  ;;  %v1100_v62 = vld [vmem:[%s1821_s4 + $0x3] ss:$0 sm:$0xff]  ;;  %s1195_s4 = smov [#allocation2]  }
 0x4c2   :  { %933 = vmatprep.subr.mxu1 %v1190_v7 }
 0x4c3   :  { %v666_v0 = vsel %vm143_vm2, 0.0, %v664_v63  ;;  %v667_v1 = vsel %vm143_vm2, %v664_v63, 0.0  ;;  %934 = vmatpush1.msra.mxu1 %v1105_v58 }
 0x4c4   :  { %v688_v2 = vrot.slane %v666_v0, 4  ;;  %v689_v3 = vrot.slane %v667_v1, 4  ;;  %v676_v4 = vrot.slane %v666_v0, 2  ;;  %v677_v5 = vrot.slane %v667_v1, 2  ;;  %935 = vmatprep.subr.mxu1 %v1190_v7 }
 0x4c5   :  { %v1163_v6 = vpop.eup %1162  ;;  %v670_v8 = vrot.slane %v666_v0, 1  ;;  %v671_v9 = vrot.slane %v667_v1, 1  ;;  %v682_v10 = vrot.slane %v666_v0, 3  ;;  %v683_v14 = vrot.slane %v667_v1, 3  ;;  %936 = vmatpush1.msra.mxu1 %v1104_v59 }
 0x4c6   :  { %v695_v11 = vrot.slane %v1163_v6, 6  ;;  %v690_v12 = vsel %vm169_vm4, %v688_v2, %v689_v3  ;;  %v678_v13 = vsel %vm155_vm6, %v676_v4, %v677_v5  ;;  %937 = vmatprep.subr.mxu1 %v1190_v7  ;;  %v1121_v5 = vld [vmem:[%s1820_s3 + $0x310] sm:$0xff]  ;;  %v1120_v6 = vld [vmem:[%s1820_s3 + $0x308] sm:$0xff] }
 0x4c7   :  { %1101 = vmatprep.mubr.msk.f32.mxu0 %vm34_vm0, %v690_v12  ;;  %679 = vrot.lane.b32.xlu1 %v678_v13, %s1193_s19  ;;  %v672_v15 = vsel %vm148_vm3, %v670_v8, %v671_v9  ;;  %v684_v20 = vsel %vm162_vm5, %v682_v10, %v683_v14  ;;  %v1119_v8 = vld [vmem:[%s1820_s3 + $0x300] sm:$0xff] }
 0x4c8   :  { %v697_v16 = vsel %vm143_vm2, 0.0, %v695_v11  ;;  %v698_v17 = vsel %vm143_vm2, %v695_v11, 0.0  ;;  %673 = vrot.lane.b32.xlu0 %v672_v15, %s1191_s17  ;;  %938 = vmatpush1.msra.mxu1 %v1103_v60 }
 0x4c9   :  { %v701_v18 = vrot.slane %v697_v16, 1  ;;  %v702_v19 = vrot.slane %v698_v17, 1  ;;  %v707_v21 = vrot.slane %v697_v16, 2  ;;  %v708_v23 = vrot.slane %v698_v17, 2  ;;  %963 = vmatprep.subr.mxu1 %v1190_v7 }
 0x4ca   :  { %v713_v24 = vrot.slane %v697_v16, 3  ;;  %v714_v25 = vrot.slane %v698_v17, 3  ;;  %v719_v33 = vrot.slane %v697_v16, 4  ;;  %v720_v34 = vrot.slane %v698_v17, 4  ;;  %964 = vmatpush2.msra.mxu1 %v1122_v61 }
 0x4cb   :  { %v703_v22 = vsel %vm148_vm3, %v701_v18, %v702_v19  ;;  %v709_v26 = vsel %vm155_vm6, %v707_v21, %v708_v23  ;;  %965 = vmatprep.subr.mxu1 %v1190_v7 }
 0x4cc   :  { %685 = vrot.lane.b32.xlu0 %v684_v20, %s1192_s18  ;;  %704 = vrot.lane.b32.xlu1 %v703_v22, %s1191_s17  ;;  %v715_v27 = vsel %vm162_vm5, %v713_v24, %v714_v25  ;;  %v721_v39 = vsel %vm169_vm4, %v719_v33, %v720_v34 }
 0x4cd   :  { %966 = vmatpush2.msra.mxu1 %v1121_v5 }
 0x4ce   :  { %967 = vmatprep.subr.mxu1 %v1190_v7 }
 0x4cf   :  { %968 = vmatpush2.msra.mxu1 %v1120_v6 }
 0x4d0   :  { %710 = vrot.lane.b32.xlu0 %v709_v26, %s1193_s19  ;;  %716 = vrot.lane.b32.xlu1 %v715_v27, %s1192_s18 }
 0x4d1   :  { %969 = vmatprep.subr.mxu1 %v1190_v7 }
 0x4d2   :  { %970 = vmatpush2.msra.mxu1 %v1119_v8 }
 0x539   :  { %v680_v29 = vpop.permute.xlu1 %679 }
 0x53a   :  { %v674_v30 = vpop.permute.xlu0 %673 }
 0x53b   :  { %v691_v32 = vsel %vm34_vm0, %v666_v0, %v674_v30 }
 0x53c   :  { %v692_v35 = vsel %vm174_vm7, %v691_v32, %v680_v29 }
 0x53e   :  { %v686_v36 = vpop.permute.xlu0 %685  ;;  %v705_v37 = vpop.permute.xlu1 %704 }
 0x53f   :  { %v693_v38 = vsel %vm176_vm8, %v692_v35, %v686_v36  ;;  %v722_v40 = vsel %vm34_vm0, %v697_v16, %v705_v37 }
 0x540   :  { %800 = vmatmul.mubr.f32.vlgmr.msra.gmra.mxu0 %v693_v38 }
 0x541   :  { %1102 = vmatprep.mubr.msk.f32.mxu0 %vm34_vm0, %v721_v39 }
 0x542   :  { %v711_v41 = vpop.permute.xlu0 %710  ;;  %v717_v42 = vpop.permute.xlu1 %716 }
 0x543   :  { %v723_v43 = vsel %vm174_vm7, %v722_v40, %v711_v41 }
 0x544   :  { %v724_v44 = vsel %vm176_vm8, %v723_v43, %v717_v42 }
 0x545   :  { %805 = vmatmul.mubr.f32.gmra.mxu0 %v724_v44 }
 0x600   :  { %v801_v63 = vpop.f32.mrf.mxu0 }
 0x601   :  { %v802_v0 = vadd.f32 %v1100_v62, %v801_v63 }
 0x602   :  { %v803_v1 = vpop.f32.mrf.mxu0 }
 0x603   :  { %1164 = vtanh.f32 %v802_v0 }
 0x605   :  { %v806_v2 = vpop.f32.mrf.mxu0 }
 0x606   :  { %v807_v3 = vadd.f32 %v1100_v62, %v806_v2 }
 0x607   :  { %v808_v4 = vpop.f32.mrf.mxu0 }
 0x608   :  { %1166 = vtanh.f32 %v807_v3 }
 0x610   :  { %v1165_v9 = vpop.eup %1164 }
 0x611   :  { %v836_v10 = vrot.slane %v1165_v9, 6 }
 0x613   :  { %v838_v11 = vsel %vm143_vm2, 0.0, %v836_v10  ;;  %v839_v12 = vsel %vm143_vm2, %v836_v10, 0.0 }
 0x614   :  { %v860_v13 = vrot.slane %v838_v11, 4  ;;  %v861_v14 = vrot.slane %v839_v12, 4  ;;  %v848_v15 = vrot.slane %v838_v11, 2  ;;  %v849_v16 = vrot.slane %v839_v12, 2 }
 0x615   :  { %v1167_v17 = vpop.eup %1166  ;;  %v842_v18 = vrot.slane %v838_v11, 1  ;;  %v843_v19 = vrot.slane %v839_v12, 1  ;;  %v854_v20 = vrot.slane %v838_v11, 3  ;;  %v855_v23 = vrot.slane %v839_v12, 3 }
 0x616   :  { %v867_v7 = vrot.slane %v1167_v17, 6  ;;  %v862_v21 = vsel %vm169_vm4, %v860_v13, %v861_v14  ;;  %v850_v22 = vsel %vm155_vm6, %v848_v15, %v849_v16 }
 0x617   :  { %1125 = vmatprep.mubr.msk.f32.mxu1 %vm34_vm0, %v862_v21  ;;  %851 = vrot.lane.b32.xlu1 %v850_v22, %s1193_s19  ;;  %v844_v24 = vsel %vm148_vm3, %v842_v18, %v843_v19  ;;  %v856_v30 = vsel %vm162_vm5, %v854_v20, %v855_v23 }
 0x618   :  { %v869_v25 = vsel %vm143_vm2, 0.0, %v867_v7  ;;  %v870_v26 = vsel %vm143_vm2, %v867_v7, 0.0  ;;  %845 = vrot.lane.b32.xlu0 %v844_v24, %s1191_s17 }
 0x619   :  { %v873_v27 = vrot.slane %v869_v25, 1  ;;  %v874_v29 = vrot.slane %v870_v26, 1  ;;  %v879_v32 = vrot.slane %v869_v25, 2  ;;  %v880_v34 = vrot.slane %v870_v26, 2 }
 0x61a   :  { %v885_v35 = vrot.slane %v869_v25, 3  ;;  %v886_v36 = vrot.slane %v870_v26, 3  ;;  %v891_v42 = vrot.slane %v869_v25, 4  ;;  %v892_v43 = vrot.slane %v870_v26, 4 }
 0x61b   :  { %v875_v33 = vsel %vm148_vm3, %v873_v27, %v874_v29  ;;  %v881_v37 = vsel %vm155_vm6, %v879_v32, %v880_v34 }
 0x61c   :  { %857 = vrot.lane.b32.xlu0 %v856_v30, %s1192_s18  ;;  %876 = vrot.lane.b32.xlu1 %v875_v33, %s1191_s17  ;;  %v887_v38 = vsel %vm162_vm5, %v885_v35, %v886_v36  ;;  %v893_v48 = vsel %vm169_vm4, %v891_v42, %v892_v43 }
 0x620   :  { %882 = vrot.lane.b32.xlu0 %v881_v37, %s1193_s19  ;;  %888 = vrot.lane.b32.xlu1 %v887_v38, %s1192_s18  ;;  %s1194_s18 = smov 16   ;;  %s1014_s19 = sshll.u32 %s1195_s4, 4  ;;  %s1015_s19 = int_to_ptr.vmem [resolvable:$true] %s1014_s19 }
 0x621   :  { %s1168_s11 = scalar_lea.vmem %s1015_s19, 256  ;;  %p1173_p1 = scmp.lt.s32.totalorder %s1015_s19, %s1015_s19 }
 0x622   :  { %p1169_p0 = scmp.ne.s32.totalorder %s1015_s19, %s1168_s11  ;;  %p1174_p2 = scmp.lt.s32.totalorder %s1168_s11, %s1168_s11 }
 0x624   :  { %p1175_p3 = por %p1174_p2, %p1173_p1 }
 0x626   :  { %p1176_p4 = pnand %p1175_p3, %p1169_p0 }
 0x689   :  { %v852_v39 = vpop.permute.xlu1 %851 }
 0x68a   :  { %v846_v40 = vpop.permute.xlu0 %845 }
 0x68b   :  { %v863_v41 = vsel %vm34_vm0, %v838_v11, %v846_v40 }
 0x68c   :  { %v864_v44 = vsel %vm174_vm7, %v863_v41, %v852_v39 }
 0x68e   :  { %v858_v45 = vpop.permute.xlu0 %857  ;;  %v877_v46 = vpop.permute.xlu1 %876 }
 0x68f   :  { %v865_v47 = vsel %vm176_vm8, %v864_v44, %v858_v45  ;;  %v894_v49 = vsel %vm34_vm0, %v869_v25, %v877_v46 }
 0x690   :  { %972 = vmatmul.mubr.f32.vlgmr.msra.gmra.mxu1 %v865_v47 }
 0x691   :  { %1126 = vmatprep.mubr.msk.f32.mxu1 %vm34_vm0, %v893_v48 }
 0x692   :  { %v883_v50 = vpop.permute.xlu0 %882  ;;  %v889_v51 = vpop.permute.xlu1 %888 }
 0x693   :  { %v895_v52 = vsel %vm174_vm7, %v894_v49, %v883_v50 }
 0x694   :  { %v896_v53 = vsel %vm176_vm8, %v895_v52, %v889_v51 }
 0x695   :  { %977 = vmatmul.mubr.f32.gmra.mxu1 %v896_v53 }
 0x750   :  { %v973_v55 = vpop.f32.mrf.mxu1 }
 0x751   :  { %v974_v56 = vadd.f32 %v1124_v54, %v973_v55 }
 0x752   :  { %v975_v57 = vpop.f32.mrf.mxu1 }
 0x753   :  { %v982_v58 = vadd.f32 %v974_v56, %v1332_v31 }
 0x755   :  { %986 = vrot.lane.b32.xlu0 %v982_v58, %s1194_s18  ;;  %v978_v59 = vpop.f32.mrf.mxu1 }
 0x756   :  { %v979_v60 = vadd.f32 %v1124_v54, %v978_v59 }
 0x757   :  { %v980_v61 = vpop.f32.mrf.mxu1 }
 0x758   :  { %v983_v62 = vadd.f32 %v979_v60, %v1327_v28 }
 0x759   :  { %994 = vrot.lane.b32.xlu0 %v1332_v31, %s1194_s18 }
 0x75a   :  { %988 = vrot.lane.b32.xlu1 %v983_v62, %s1194_s18 }
 0x75e   :  { %996 = vrot.lane.b32.xlu1 %v1327_v28, %s1194_s18 }
 0x7c7   :  { %v987_v63 = vpop.permute.xlu0 %986 }
 0x7c8   :  { %v1000_v0 = vsel %vm116_vm1, %v1332_v31, %v987_v63 }
 0x7cb   :  { %v995_v1 = vpop.permute.xlu0 %994 }
 0x7cc   :  { %v1002_v2 = vsel %vm34_vm0, %v1000_v0, %v995_v1  ;;  %v989_v3 = vpop.permute.xlu1 %988 }
 0x7cd   :  { %v1005_v4 = vsel %vm1004_vm9, %v1002_v2, 0.0  ;;  %v1001_v5 = vsel %vm116_vm1, %v1327_v28, %v989_v3 }
 0x7ce   :  { %1007 = vst [vmem:[#allocation2] sm:$0xff] %v1005_v4 }
 0x7d0   :  { %v997_v6 = vpop.permute.xlu1 %996 }
 0x7d1   :  { %v1003_v8 = vsel %vm34_vm0, %v1001_v5, %v997_v6 }
 0x7d2   :  { %v1006_v9 = vsel %vm1004_vm9, %v1003_v8, 0.0 }
 0x7d3   :  { %1008 = vst [vmem:[#allocation2 + $0x8] sm:$0xff] %v1006_v9 }
 0x7d4   :  { %1179 = shalt.err (!%p1176_p4)
}
 0x7d5   :  { %s1196_s12 = smov 128   ;;  %s1197_s13 = smov 8  }
 0x7d6   :  { %1020 = dma.vmem_to_hbm [thread:$0]  %s1015_s19, 256, %s1822_s5, [#allocation3], %s1196_s12, %s1196_s12, %s1197_s13  }
 0x7d7   :  { %1188 = dma.done.wait [#allocation3], 256  }
 0x7d8   :  { %1189 = vsyncadd [#allocation3], 4294967040 }
 0x7d9   :  { %1024 = vsyncpa [#allocation3], 1 }

</bundles_post_ra>
